<compile_context>
chip_gen: v5e
topology: v5e:2x2
jax: 0.10.0
libtpu: 0.0.40
codegen_flags: <defaults>
</compile_context>

<pallas_src>
import jax
import jax.numpy as jnp
from jax.experimental import pallas as pl
from jax.experimental.pallas import tpu as pltpu


# ---------------------------------------------------------------------------
# Schedule (module "parameters")
# ---------------------------------------------------------------------------
def get_betas(steps, mn=1e-6, mx=1 - 1e-6):
    return jnp.linspace(mn, mx, steps, dtype=jnp.float32)


def get_alphas(betas):
    return jnp.cumprod(1.0 - betas, axis=0)


# ---------------------------------------------------------------------------
# Kernels
# ---------------------------------------------------------------------------
_HAS_STATEFUL_NORMAL = hasattr(pltpu, "stateful_normal")
_TARGET_BLOCK_BYTES = 3 * 512 * 1024          # ~1.5 MiB per array block (v7x-safe)
_VMEM_LIMIT_BYTES = 32 * 1024 * 1024          # <= physical VMEM on v5e/v6e/v7x


def _block_scales(sa_ref, s1_ref, tr):
    """Slice the VMEM-resident per-row scale vectors for the current row tile."""
    r0 = pl.multiple_of(pl.program_id(0) * tr, 8)
    return sa_ref[pl.ds(r0, tr), :], s1_ref[pl.ds(r0, tr), :]


def _noising_rng_kernel(seed_ref, sa_ref, s1_ref, x_ref, out_ref, noise_ref):
    """out = N(0,1) * sqrt(1-a) + sqrt(a) * x, with noise drawn on-chip."""
    tr = x_ref.shape[0]
    sa, s1 = _block_scales(sa_ref, s1_ref, tr)
    # Distinct PRNG stream per grid block.
    i, j = pl.program_id(0), pl.program_id(1)
    pltpu.prng_seed(seed_ref[0] + i * pl.num_programs(1) + j)
    n = pltpu.stateful_normal(x_ref.shape, jnp.float32)
    noise_ref[...] = n.astype(noise_ref.dtype)
    out_ref[...] = (n * s1 + sa * x_ref[...].astype(jnp.float32)).astype(out_ref.dtype)


def _noising_premade_kernel(sa_ref, s1_ref, x_ref, n_ref, out_ref):
    """Fallback: noise precomputed on the host and streamed from HBM."""
    tr = x_ref.shape[0]
    sa, s1 = _block_scales(sa_ref, s1_ref, tr)
    out_ref[...] = (n_ref[...] * s1 + sa * x_ref[...]).astype(out_ref.dtype)


# ---------------------------------------------------------------------------
# Tiling heuristics
# ---------------------------------------------------------------------------
def _choose_tiles(R, L, itemsize):
    """Pick (row_tile, col_tile) targeting ~1.5 MiB lane-dense blocks."""
    target_elems = max(1024, _TARGET_BLOCK_BYTES // itemsize)
    if 8 * L <= target_elems:
        # Full rows fit comfortably: keep the full (lane-dense) last dim.
        tc = L
        tr = min(max(1, target_elems // L), ((R + 7) // 8) * 8)
        tr = max(8, (tr // 8) * 8)
    else:
        # Very wide rows: tile the lane dim with a large 128-aligned chunk.
        tr = 8
        tc = min(L, max(128, ((target_elems // 8) // 128) * 128))
    # v7x has two TensorCores per chip: prefer >= 2 parallel grid steps when the
    # shape allows (cost elsewhere: one extra ~0.35us grid step).
    if pl.cdiv(R, tr) * pl.cdiv(L, tc) == 1:
        if R >= 16:
            tr = max(8, ((pl.cdiv(R, 2) + 7) // 8) * 8)
        elif tc == L and L % 256 == 0:
            tc = L // 2
    return tr, tc


# ---------------------------------------------------------------------------
# Forward wrapper
# ---------------------------------------------------------------------------
def noising_forward(alphas_bar, x, t, *, noise=None, seed=0):
    """Returns (noise * sqrt(1 - a[t]) + sqrt(a[t]) * x, noise)."""
    B, C, H, W = x.shape
    R, L = B * C, H * W
    x2 = x.reshape(R, L)

    # O(R) glue: gather the schedule and precompute both scale vectors once.
    a = alphas_bar[t.reshape(-1)].astype(jnp.float32)        # (R,)
    sa = jnp.sqrt(a)                                         # mean scale
    s1 = jnp.sqrt(1.0 - a)                                   # noise scale

    tr, tc = _choose_tiles(R, L, x.dtype.itemsize)
    grid = (pl.cdiv(R, tr), pl.cdiv(L, tc))
    r_pad = grid[0] * tr          # pad scales so in-kernel slices stay in-bounds
    if r_pad != R:
        sa = jnp.pad(sa, (0, r_pad - R))
        s1 = jnp.pad(s1, (0, r_pad - R))
    sa = sa.reshape(r_pad, 1)
    s1 = s1.reshape(r_pad, 1)

    # Scales: full-array block + constant index_map -> DMA'd once, resident in
    # VMEM for the whole grid (no per-step tiny DMA, no per-step sqrt).
    scale_spec = pl.BlockSpec((r_pad, 1), lambda i, j, *_: (0, 0))
    tile_spec = pl.BlockSpec((tr, tc), lambda i, j, *_: (i, j))
    cparams = pltpu.CompilerParams(
        dimension_semantics=("parallel", "parallel"),
        vmem_limit_bytes=_VMEM_LIMIT_BYTES,
    )

    if noise is None and _HAS_STATEFUL_NORMAL:
        try:
            out2, n2 = pl.pallas_call(
                _noising_rng_kernel,
                out_shape=(
                    jax.ShapeDtypeStruct((R, L), x.dtype),
                    jax.ShapeDtypeStruct((R, L), x.dtype),
                ),
                grid_spec=pltpu.PrefetchScalarGridSpec(
                    num_scalar_prefetch=1,
                    grid=grid,
                    in_specs=[scale_spec, scale_spec, tile_spec],
                    out_specs=(tile_spec, tile_spec),
                ),
                compiler_params=cparams,
            )(jnp.asarray([seed], dtype=jnp.int32), sa, s1, x2)
            jax.block_until_ready((out2, n2))  # surface any deferred errors here
            return out2.reshape(B, C, H, W), n2.reshape(B, C, H, W)
        except Exception:
            pass  # in-kernel RNG unavailable on this backend: use fallback path

    if noise is None:
        # Host-side noise (not bitwise-equal to torch.randn, but same distribution).
        noise = jax.random.normal(jax.random.PRNGKey(seed), x.shape, dtype=x.dtype)
    n2 = noise.reshape(R, L)
    out2 = pl.pallas_call(
        _noising_premade_kernel,
        out_shape=jax.ShapeDtypeStruct((R, L), x.dtype),
        grid_spec=pltpu.PrefetchScalarGridSpec(
            num_scalar_prefetch=0,
            grid=grid,
            in_specs=[scale_spec, scale_spec, tile_spec, tile_spec],
            out_specs=tile_spec,
        ),
        compiler_params=cparams,
    )(sa, s1, x2, n2)
    return out2.reshape(B, C, H, W), noise


if __name__ == "__main__":
    steps = 100
    B, C, H, W = 2, 4, 16, 16

    # Deterministic "module parameters": the alpha_bar schedule.
    alphas_bar = get_alphas(get_betas(steps))

    key = jax.random.PRNGKey(0)
    kx, kt = jax.random.split(key, 2)
    x = jax.random.normal(kx, (B, C, H, W), dtype=jnp.float32)
    # one timestep per (batch, channel) pair, as implied by .view(B, C, 1, 1)
    t = jax.random.randint(kt, (B, C), 0, steps)

    noised, noise = noising_forward(alphas_bar, x, t, seed=1234)
    noised = jax.block_until_ready(noised)
    noise = jax.block_until_ready(noise)

    assert noised.shape == (B, C, H, W) and noised.dtype == x.dtype
    assert noise.shape == (B, C, H, W) and noise.dtype == x.dtype

    # The fused math must reproduce out = noise*sqrt(1-a) + sqrt(a)*x for the
    # noise the kernel actually used and returned.
    a_full = alphas_bar[t].reshape(B, C, 1, 1)
    ref = noise * jnp.sqrt(1.0 - a_full) + jnp.sqrt(a_full) * x
    assert jnp.allclose(noised, ref, atol=1e-5, rtol=1e-5)

    # Loose sanity check on the Gaussian noise (bounds are >10 sigma for N=2048).
    m = float(jnp.mean(noise))
    s = float(jnp.std(noise))
    assert abs(m) < 0.35 and 0.55 < s < 1.45, (m, s)

    print("KERNEL_OK")
</pallas_src>

<mosaic_0001>
module attributes {stable_mosaic.version = 11 : i64} {
  func.func @_noising_rng_kernel(%arg0: i32, %arg1: i32, %arg2: memref<1xi32, #tpu.memory_space<smem>>, %arg3: memref<8x1xf32, #tpu.memory_space<vmem>>, %arg4: memref<8x1xf32, #tpu.memory_space<vmem>>, %arg5: memref<8x128xf32, #tpu.memory_space<vmem>>, %arg6: memref<8x128xf32, #tpu.memory_space<vmem>>, %arg7: memref<8x128xf32, #tpu.memory_space<vmem>>) attributes {dimension_semantics = [#tpu.dimension_semantics<parallel>, #tpu.dimension_semantics<parallel>], iteration_bounds = array<i64: 1, 2>, scalar_prefetch = 1 : i64, scratch_operands = 0 : i64, tpu.core_type = #tpu.core_type<tc>, window_params = [{pipeline_mode = #tpu.pipeline_mode<synchronous>, transform_indices = @transform_0, window_bounds = array<i64: 8, 1>}, {pipeline_mode = #tpu.pipeline_mode<synchronous>, transform_indices = @transform_1, window_bounds = array<i64: 8, 1>}, {transform_indices = @transform_2, window_bounds = array<i64: 8, 128>}, {transform_indices = @transform_3, window_bounds = array<i64: 8, 128>}, {transform_indices = @transform_4, window_bounds = array<i64: 8, 128>}]} {
    %c8_i32 = arith.constant 8 : i32
    %0 = arith.muli %arg0, %c8_i32 : i32
    %1 = tpu.assume_multiple %0, 8 : i32
    %2 = arith.index_cast %1 : i32 to index
    %c0 = arith.constant 0 : index
    %3 = vector.load %arg3[%2, %c0] : memref<8x1xf32, #tpu.memory_space<vmem>>, vector<8x1xf32>
    %4 = arith.index_cast %1 : i32 to index
    %c0_0 = arith.constant 0 : index
    %5 = vector.load %arg4[%4, %c0_0] : memref<8x1xf32, #tpu.memory_space<vmem>>, vector<8x1xf32>
    %c0_1 = arith.constant 0 : index
    %6 = memref.load %arg2[%c0_1] : memref<1xi32, #tpu.memory_space<smem>>
    %c2_i32 = arith.constant 2 : i32
    %7 = arith.muli %arg0, %c2_i32 : i32
    %8 = arith.addi %6, %7 : i32
    %9 = arith.addi %8, %arg1 : i32
    "tpu.prng_set_seed_32"(%9) : (i32) -> ()
    %c0_i32 = arith.constant 0 : i32
    %c0_i32_2 = arith.constant 0 : i32
    %cst = arith.constant -0.99999994 : f32
    %cst_3 = arith.constant 1.000000e+00 : f32
    %10 = vector.broadcast %cst : f32 to vector<1x1xf32>
    %11 = vector.broadcast %cst_3 : f32 to vector<1x1xf32>
    %12 = "tpu.prng_random_bits"() : () -> vector<8x128xi32>
    %c9_i32 = arith.constant 9 : i32
    %13 = vector.broadcast %c9_i32 : i32 to vector<8x128xi32>
    %14 = arith.shrui %12, %13 : vector<8x128xi32>
    %c1065353216_i32 = arith.constant 1065353216 : i32
    %15 = vector.broadcast %c1065353216_i32 : i32 to vector<8x128xi32>
    %16 = arith.ori %14, %15 : vector<8x128xi32>
    %17 = tpu.bitcast %16 : vector<8x128xi32> -> vector<8x128xf32>
    %cst_4 = arith.constant 1.000000e+00 : f32
    %18 = vector.broadcast %cst_4 : f32 to vector<8x128xf32>
    %19 = arith.subf %17, %18 : vector<8x128xf32>
    %20 = arith.subf %11, %10 : vector<1x1xf32>
    %21 = vector.broadcast %20 : vector<1x1xf32> to vector<8x128xf32>
    %22 = arith.mulf %19, %21 : vector<8x128xf32>
    %23 = vector.broadcast %10 : vector<1x1xf32> to vector<8x128xf32>
    %24 = arith.addf %22, %23 : vector<8x128xf32>
    %25 = vector.broadcast %10 : vector<1x1xf32> to vector<8x128xf32>
    %26 = arith.maximumf %25, %24 : vector<8x128xf32>
    %cst_5 = arith.constant 0.000000e+00 : f32
    %27 = vector.broadcast %cst_5 : f32 to vector<8x128xf32>
    %28 = arith.subf %27, %26 : vector<8x128xf32>
    %29 = arith.mulf %26, %28 : vector<8x128xf32>
    %30 = math.log1p %29 : vector<8x128xf32>
    %cst_6 = arith.constant 0.000000e+00 : f32
    %31 = vector.broadcast %cst_6 : f32 to vector<8x128xf32>
    %32 = arith.subf %31, %30 : vector<8x128xf32>
    %cst_7 = arith.constant 5.000000e+00 : f32
    %33 = vector.broadcast %cst_7 : f32 to vector<8x128xf32>
    %34 = arith.cmpf olt, %32, %33 : vector<8x128xf32>
    %cst_8 = arith.constant 2.500000e+00 : f32
    %35 = vector.broadcast %cst_8 : f32 to vector<8x128xf32>
    %36 = arith.subf %32, %35 : vector<8x128xf32>
    %37 = math.sqrt %32 : vector<8x128xf32>
    %cst_9 = arith.constant 3.000000e+00 : f32
    %38 = vector.broadcast %cst_9 : f32 to vector<8x128xf32>
    %39 = arith.subf %37, %38 : vector<8x128xf32>
    %40 = arith.select %34, %36, %39 : vector<8x128xi1>, vector<8x128xf32>
    %cst_10 = arith.constant 2.81022636E-8 : f32
    %cst_11 = arith.constant -2.00214257E-4 : f32
    %41 = vector.broadcast %cst_10 : f32 to vector<8x128xf32>
    %42 = vector.broadcast %cst_11 : f32 to vector<8x128xf32>
    %43 = arith.select %34, %41, %42 : vector<8x128xi1>, vector<8x128xf32>
    %cst_12 = arith.constant 3.43273939E-7 : f32
    %cst_13 = arith.constant 1.00950558E-4 : f32
    %44 = vector.broadcast %cst_12 : f32 to vector<8x128xf32>
    %45 = vector.broadcast %cst_13 : f32 to vector<8x128xf32>
    %46 = arith.select %34, %44, %45 : vector<8x128xi1>, vector<8x128xf32>
    %47 = arith.mulf %43, %40 : vector<8x128xf32>
    %48 = arith.addf %46, %47 : vector<8x128xf32>
    %cst_14 = arith.constant -3.5233877E-6 : f32
    %cst_15 = arith.constant 0.00134934322 : f32
    %49 = vector.broadcast %cst_14 : f32 to vector<8x128xf32>
    %50 = vector.broadcast %cst_15 : f32 to vector<8x128xf32>
    %51 = arith.select %34, %49, %50 : vector<8x128xi1>, vector<8x128xf32>
    %52 = arith.mulf %48, %40 : vector<8x128xf32>
    %53 = arith.addf %51, %52 : vector<8x128xf32>
    %cst_16 = arith.constant -4.39150654E-6 : f32
    %cst_17 = arith.constant -0.00367342844 : f32
    %54 = vector.broadcast %cst_16 : f32 to vector<8x128xf32>
    %55 = vector.broadcast %cst_17 : f32 to vector<8x128xf32>
    %56 = arith.select %34, %54, %55 : vector<8x128xi1>, vector<8x128xf32>
    %57 = arith.mulf %53, %40 : vector<8x128xf32>
    %58 = arith.addf %56, %57 : vector<8x128xf32>
    %cst_18 = arith.constant 2.1858087E-4 : f32
    %cst_19 = arith.constant 0.00573950773 : f32
    %59 = vector.broadcast %cst_18 : f32 to vector<8x128xf32>
    %60 = vector.broadcast %cst_19 : f32 to vector<8x128xf32>
    %61 = arith.select %34, %59, %60 : vector<8x128xi1>, vector<8x128xf32>
    %62 = arith.mulf %58, %40 : vector<8x128xf32>
    %63 = arith.addf %61, %62 : vector<8x128xf32>
    %cst_20 = arith.constant -0.00125372503 : f32
    %cst_21 = arith.constant -0.0076224613 : f32
    %64 = vector.broadcast %cst_20 : f32 to vector<8x128xf32>
    %65 = vector.broadcast %cst_21 : f32 to vector<8x128xf32>
    %66 = arith.select %34, %64, %65 : vector<8x128xi1>, vector<8x128xf32>
    %67 = arith.mulf %63, %40 : vector<8x128xf32>
    %68 = arith.addf %66, %67 : vector<8x128xf32>
    %cst_22 = arith.constant -0.00417768164 : f32
    %cst_23 = arith.constant 0.00943887047 : f32
    %69 = vector.broadcast %cst_22 : f32 to vector<8x128xf32>
    %70 = vector.broadcast %cst_23 : f32 to vector<8x128xf32>
    %71 = arith.select %34, %69, %70 : vector<8x128xi1>, vector<8x128xf32>
    %72 = arith.mulf %68, %40 : vector<8x128xf32>
    %73 = arith.addf %71, %72 : vector<8x128xf32>
    %cst_24 = arith.constant 0.246640727 : f32
    %cst_25 = arith.constant 1.00167406 : f32
    %74 = vector.broadcast %cst_24 : f32 to vector<8x128xf32>
    %75 = vector.broadcast %cst_25 : f32 to vector<8x128xf32>
    %76 = arith.select %34, %74, %75 : vector<8x128xi1>, vector<8x128xf32>
    %77 = arith.mulf %73, %40 : vector<8x128xf32>
    %78 = arith.addf %76, %77 : vector<8x128xf32>
    %cst_26 = arith.constant 1.50140941 : f32
    %cst_27 = arith.constant 2.83297682 : f32
    %79 = vector.broadcast %cst_26 : f32 to vector<8x128xf32>
    %80 = vector.broadcast %cst_27 : f32 to vector<8x128xf32>
    %81 = arith.select %34, %79, %80 : vector<8x128xi1>, vector<8x128xf32>
    %82 = arith.mulf %78, %40 : vector<8x128xf32>
    %83 = arith.addf %81, %82 : vector<8x128xf32>
    %84 = math.absf %26 : vector<8x128xf32>
    %cst_28 = arith.constant 1.000000e+00 : f32
    %85 = vector.broadcast %cst_28 : f32 to vector<8x128xf32>
    %86 = arith.cmpf oeq, %84, %85 : vector<8x128xf32>
    %cst_29 = arith.constant 0x7F800000 : f32
    %87 = vector.broadcast %cst_29 : f32 to vector<8x128xf32>
    %88 = arith.mulf %87, %26 : vector<8x128xf32>
    %89 = arith.mulf %83, %26 : vector<8x128xf32>
    %90 = arith.select %86, %88, %89 : vector<8x128xi1>, vector<8x128xf32>
    %cst_30 = arith.constant 1.41421354 : f32
    %91 = vector.broadcast %cst_30 : f32 to vector<8x128xf32>
    %92 = arith.mulf %91, %90 : vector<8x128xf32>
    %c0_31 = arith.constant 0 : index
    %c0_32 = arith.constant 0 : index
    %93 = vector.load %arg7[%c0_31, %c0_32] : memref<8x128xf32, #tpu.memory_space<vmem>>, vector<8x128xf32>
    tpu.vector_store %arg7[%c0_31, %c0_32], %92 {strides = array<i32>} : memref<8x128xf32, #tpu.memory_space<vmem>>, vector<8x128xf32>,
    %94 = vector.broadcast %5 : vector<8x1xf32> to vector<8x128xf32>
    %95 = arith.mulf %92, %94 : vector<8x128xf32>
    %c0_33 = arith.constant 0 : index
    %c0_34 = arith.constant 0 : index
    %96 = vector.load %arg5[%c0_33, %c0_34] : memref<8x128xf32, #tpu.memory_space<vmem>>, vector<8x128xf32>
    %97 = vector.broadcast %3 : vector<8x1xf32> to vector<8x128xf32>
    %98 = arith.mulf %97, %96 : vector<8x128xf32>
    %99 = arith.addf %95, %98 : vector<8x128xf32>
    %c0_35 = arith.constant 0 : index
    %c0_36 = arith.constant 0 : index
    %100 = vector.load %arg6[%c0_35, %c0_36] : memref<8x128xf32, #tpu.memory_space<vmem>>, vector<8x128xf32>
    tpu.vector_store %arg6[%c0_35, %c0_36], %99 {strides = array<i32>} : memref<8x128xf32, #tpu.memory_space<vmem>>, vector<8x128xf32>,
    return
  }
  func.func @transform_0(%arg0: i32, %arg1: i32, %arg2: memref<1xi32, #tpu.memory_space<smem>>) -> (i32, i32) {
    %c0_i32 = arith.constant 0 : i32
    %c0_i32_0 = arith.constant 0 : i32
    %c0_i32_1 = arith.constant 0 : i32
    return %c0_i32, %c0_i32_0 : i32, i32
  }
  func.func @transform_1(%arg0: i32, %arg1: i32, %arg2: memref<1xi32, #tpu.memory_space<smem>>) -> (i32, i32) {
    %c0_i32 = arith.constant 0 : i32
    %c0_i32_0 = arith.constant 0 : i32
    %c0_i32_1 = arith.constant 0 : i32
    return %c0_i32, %c0_i32_0 : i32, i32
  }
  func.func @transform_2(%arg0: i32, %arg1: i32, %arg2: memref<1xi32, #tpu.memory_space<smem>>) -> (i32, i32) {
    %c0_i32 = arith.constant 0 : i32
    return %arg0, %arg1 : i32, i32
  }
  func.func @transform_3(%arg0: i32, %arg1: i32, %arg2: memref<1xi32, #tpu.memory_space<smem>>) -> (i32, i32) {
    %c0_i32 = arith.constant 0 : i32
    return %arg0, %arg1 : i32, i32
  }
  func.func @transform_4(%arg0: i32, %arg1: i32, %arg2: memref<1xi32, #tpu.memory_space<smem>>) -> (i32, i32) {
    %c0_i32 = arith.constant 0 : i32
    return %arg0, %arg1 : i32, i32
  }
}

module attributes {stable_mosaic.version = 11 : i64} {
  func.func @_noising_premade_kernel(%arg0: i32, %arg1: i32, %arg2: memref<8x1xf32, #tpu.memory_space<vmem>>, %arg3: memref<8x1xf32, #tpu.memory_space<vmem>>, %arg4: memref<8x128xf32, #tpu.memory_space<vmem>>, %arg5: memref<8x128xf32, #tpu.memory_space<vmem>>, %arg6: memref<8x128xf32, #tpu.memory_space<vmem>>) attributes {dimension_semantics = [#tpu.dimension_semantics<parallel>, #tpu.dimension_semantics<parallel>], iteration_bounds = array<i64: 1, 2>, scalar_prefetch = 0 : i64, scratch_operands = 0 : i64, tpu.core_type = #tpu.core_type<tc>, window_params = [{pipeline_mode = #tpu.pipeline_mode<synchronous>, transform_indices = @transform_0, window_bounds = array<i64: 8, 1>}, {pipeline_mode = #tpu.pipeline_mode<synchronous>, transform_indices = @transform_1, window_bounds = array<i64: 8, 1>}, {transform_indices = @transform_2, window_bounds = array<i64: 8, 128>}, {transform_indices = @transform_3, window_bounds = array<i64: 8, 128>}, {transform_indices = @transform_4, window_bounds = array<i64: 8, 128>}]} {
    %c8_i32 = arith.constant 8 : i32
    %0 = arith.muli %arg0, %c8_i32 : i32
    %1 = tpu.assume_multiple %0, 8 : i32
    %2 = arith.index_cast %1 : i32 to index
    %c0 = arith.constant 0 : index
    %3 = vector.load %arg2[%2, %c0] : memref<8x1xf32, #tpu.memory_space<vmem>>, vector<8x1xf32>
    %4 = arith.index_cast %1 : i32 to index
    %c0_0 = arith.constant 0 : index
    %5 = vector.load %arg3[%4, %c0_0] : memref<8x1xf32, #tpu.memory_space<vmem>>, vector<8x1xf32>
    %c0_1 = arith.constant 0 : index
    %c0_2 = arith.constant 0 : index
    %6 = vector.load %arg5[%c0_1, %c0_2] : memref<8x128xf32, #tpu.memory_space<vmem>>, vector<8x128xf32>
    %7 = vector.broadcast %5 : vector<8x1xf32> to vector<8x128xf32>
    %8 = arith.mulf %6, %7 : vector<8x128xf32>
    %c0_3 = arith.constant 0 : index
    %c0_4 = arith.constant 0 : index
    %9 = vector.load %arg4[%c0_3, %c0_4] : memref<8x128xf32, #tpu.memory_space<vmem>>, vector<8x128xf32>
    %10 = vector.broadcast %3 : vector<8x1xf32> to vector<8x128xf32>
    %11 = arith.mulf %10, %9 : vector<8x128xf32>
    %12 = arith.addf %8, %11 : vector<8x128xf32>
    %c0_5 = arith.constant 0 : index
    %c0_6 = arith.constant 0 : index
    %13 = vector.load %arg6[%c0_5, %c0_6] : memref<8x128xf32, #tpu.memory_space<vmem>>, vector<8x128xf32>
    tpu.vector_store %arg6[%c0_5, %c0_6], %12 {strides = array<i32>} : memref<8x128xf32, #tpu.memory_space<vmem>>, vector<8x128xf32>,
    return
  }
  func.func @transform_0(%arg0: i32, %arg1: i32) -> (i32, i32) {
    %c0_i32 = arith.constant 0 : i32
    %c0_i32_0 = arith.constant 0 : i32
    %c0_i32_1 = arith.constant 0 : i32
    return %c0_i32, %c0_i32_0 : i32, i32
  }
  func.func @transform_1(%arg0: i32, %arg1: i32) -> (i32, i32) {
    %c0_i32 = arith.constant 0 : i32
    %c0_i32_0 = arith.constant 0 : i32
    %c0_i32_1 = arith.constant 0 : i32
    return %c0_i32, %c0_i32_0 : i32, i32
  }
  func.func @transform_2(%arg0: i32, %arg1: i32) -> (i32, i32) {
    %c0_i32 = arith.constant 0 : i32
    return %arg0, %arg1 : i32, i32
  }
  func.func @transform_3(%arg0: i32, %arg1: i32) -> (i32, i32) {
    %c0_i32 = arith.constant 0 : i32
    return %arg0, %arg1 : i32, i32
  }
  func.func @transform_4(%arg0: i32, %arg1: i32) -> (i32, i32) {
    %c0_i32 = arith.constant 0 : i32
    return %arg0, %arg1 : i32, i32
  }
}

</mosaic_0001>

<bundles_post_ra>
// kernel: tpu_custom_call.1
= control target key start
LH: loop header
LB: loop body
LE: loop exit
PB: predicated region body
PF: predicated region fallthrough
CT: control target
= control target key end

     0   :  { %s1009_s0 = inlined_call_operand.<no memory space> [shape: s32[1], index: 0, kind: input, shape index: {}]   ;;  %s1010_s1 = inlined_call_operand.vmem [shape: f32[8,1], index: 1, kind: input, shape index: {}]   ;;  %s1011_s2 = inlined_call_operand.vmem [shape: f32[8,1], index: 2, kind: input, shape index: {}]   ;;  %s1012_s3 = inlined_call_operand.vmem [shape: f32[8,256], index: 3, kind: input, shape index: {}]   ;;  %s1013_s4 = inlined_call_operand.hbm [shape: f32[8,256], index: 4, kind: output, shape index: {0}]   ;;  %s1014_s5 = inlined_call_operand.hbm [shape: f32[8,256], index: 5, kind: output, shape index: {1}]  }
   0x1   :  { %11 = sst [smem:[#allocation3]] %s1009_s0 }
   0x2   :  { %12 = vsyncpa [#allocation5], 0 }
   0x3   :  { %14 = vsyncpa [#allocation5 + $0x1], 0 }
   0x4   :  { %15 = vsyncpa [#allocation7], 0 }
   0x5   :  { %17 = vsyncpa [#allocation7 + $0x1], 0  ;;  %s850_s20 = smov 0   ;;  %s852_s21 = smov 0  }
   0x6   :  { %s854_s22 = smov 0   ;;  %s856_s23 = smov 0  }
   0x7   :  { %s858_s24 = smov 0   ;;  %s860_s25 = smov 0  }
   0x8 LB: > { %s603_s0 = sadd.s32 4294967295, %s805_s25   ;;  %s604_s26 = sadd.s32 4294967294, %s805_s25   ;;  %s805_s25 = sphi %s860_s25, %s23_s25   ;;  %s801_s24 = sphi %s858_s24, %s1021_s24   ;;  %s797_s23 = sphi %s856_s23, %s1020_s23   ;;  %s793_s22 = sphi %s854_s22, %s1019_s22   ;;  %s789_s21 = sphi %s852_s21, %s1018_s21   ;;  %s785_s20 = sphi %s850_s20, %s1017_s20  }
   0x9   : > { %s32_s27 = sadd.s32 1, %s801_s24  ;;  %s114_s28 = sadd.s32 1, %s793_s22 }
   0xa   : > { %p33_p0 = scmp.ge.s32.totalorder %s32_s27, 2  ;;  %p124_p1 = scmp.ne.s32.totalorder %s793_s22, %s789_s21 }
   0xb   : > { %p125_p2 = scmp.eq.s32.totalorder %s603_s0, 1  ;;  %p130_p3 = scmp.ne.s32.totalorder %s789_s21, %s785_s20 }
   0xc   : > { %s1023_s27 = smov (%p33_p0, %s32_s27), 0  ;;  %p131_p5 = scmp.eq.s32.totalorder %s604_s26, 1 }
   0xd   : > { %p890_p4 = por %p125_p2, %p124_p1  ;;  %s110_s30 = ssub.s32 %s801_s24, %s1023_s27 }
   0xe   : > { %p607_p6 = scmp.ge.s32.totalorder %s805_s25, 1  ;;  %p112_p7 = scmp.eq.s32.totalorder %s110_s30, 0 }
   0xf   : > { %p897_p8 = por %p131_p5, %p130_p3  ;;  %p194_p9 = scmp.lt.s32.totalorder %s805_s25, 3 }
  0x10   : > { %s903_s7 = scalar_select %p112_p7, %s793_s22, %s114_s28  }
  0x11   : > { %p195_p10 = pnand %p607_p6, %p194_p9 }
  0x12   : > { %s241_s10 = sld [smem:[#allocation3]] (!%p195_p10)  ;;  %p230_p11 = scmp.lt.s32.totalorder (!%p195_p10), %s797_s23, 1 }
  0x13   : > { %198 = sbr.rel (%p195_p10) target bundleno = 278 (0x116), region = 32  ;;  %s945_s15 = sand.u32 (!%p195_p10), 1, %s789_s21  }
  0x14   : > { %s616_s16 = sshll.u32 (!%p195_p10), %s797_s23, 3  ;;  %s608_s18 = sshll.u32 (!%p195_p10), %s945_s15, 3 }
  0x15   : > { %s484_s26 = scalar_lea.hbm (!%p195_p10), %s1014_s5, %s616_s16  ;;  %s962_s13 = scalar_lea.hbm (!%p195_p10), %s1013_s4, %s616_s16 }
  0x16   : > { %s472_s19 = sshll.u32 (!%p195_p10), %s962_s13, 4  ;;  %s456_s0 = scalar_lea.sflag (!%p195_p10), [#allocation7], %s945_s15  ;;  %s473_s19 = int_to_ptr.hbm [resolvable:$true] %s472_s19 }
  0x18   : > { %v240_v0 = vld [vmem:[%s1011_s2] sm:$0xff]  ;;  %v807_v1 = vmov 0   ;;  %v245_v2 = vlaneseq  ;;  %s244_s11 = sadd.s32 %s797_s23, %s241_s10  ;;  %s488_s10 = sshll.u32 %s484_s26, 4  ;;  %s489_s10 = int_to_ptr.hbm [resolvable:$true] %s488_s10 }
  0x19   : > { %690 = vset.pattern.permute.xlu0 %v807_v1  ;;  %v238_v3 = vld [vmem:[%s1010_s1] sm:$0xff]  ;;  %v912_v4 = vstv %s244_s11  ;;  %s231_s14 = scalar_select %p230_p11, %s797_s23, 1 }
  0x1a   : > { %437 = vperm.xlu0 %690, %v240_v0   ;;  %v249_v5 = vadd.s32 %v912_v4, %v245_v2  ;;  %v247_v20 = vxor.u32 %v912_v4, %v912_v4  ;;  %s227_s23 = scalar_lea.vmem [#allocation6], %s608_s18  ;;  %s709_s26 = sshra.s32 %s489_s10, 4  ;;  %s710_s26 = int_to_ptr.hbm [resolvable:$true] %s709_s26 }
  0x1b   : > { %s610_s17 = sshll.u32 %s231_s14, 3  ;;  %s486_s9 = sshll.u32 %s227_s23, 4  ;;  %s487_s9 = int_to_ptr.vmem [resolvable:$true] %s486_s9 }
  0x1c   : > { %v250_v6 = vadd.s32 %v249_v5, %v249_v5  ;;  %v251_v7 = vshll.u32 %v249_v5, 13  ;;  %v252_v8 = vshrl.u32 %v249_v5, 19  ;;  %v917_v25 = vxor.u32 466688986, %v247_v20  ;;  %s235_s8 = scalar_lea.vmem %s1012_s3, %s610_s17  ;;  %s220_s14 = scalar_lea.vmem [#allocation4], %s608_s18 }
  0x1d   : > { %s470_s17 = sshll.u32 %s220_s14, 4  ;;  %s711_s28 = scalar_lea.hbm %s710_s26, 8  ;;  %s471_s17 = int_to_ptr.vmem [resolvable:$true] %s470_s17 }
  0x1e   : > { %v253_v9 = vor.u32 %v252_v8, %v251_v7  ;;  %p712_p12 = scmp.ne.s32.totalorder %s710_s26, %s711_s28  ;;  %p716_p1 = scmp.lt.s32.totalorder %s710_s26, %s1014_s5 }
  0x20   : > { %v254_v10 = vxor.u32 %v253_v9, %v250_v6  ;;  %p713_p13 = pnand %p712_p12, %p890_p4 }
  0x22   : > { %444 = vperm.xlu0 %690, %v238_v3   ;;  %v255_v11 = vadd.s32 %v254_v10, %v250_v6  ;;  %v256_v12 = vshll.u32 %v254_v10, 15  ;;  %v257_v13 = vshrl.u32 %v254_v10, 17  ;;  %p714_p0 = pneg %p713_p13 }
  0x24   : > { %v258_v14 = vor.u32 %v257_v13, %v256_v12 }
  0x26   : > { %v259_v15 = vxor.u32 %v258_v14, %v255_v11 }
  0x28   : > { %v260_v16 = vadd.s32 %v259_v15, %v255_v11  ;;  %v261_v17 = vshll.u32 %v259_v15, 26  ;;  %v262_v18 = vshrl.u32 %v259_v15, 6 }
  0x2a   : > { %v263_v19 = vor.u32 %v262_v18, %v261_v17 }
  0x2c   : > { %v264_v21 = vxor.u32 %v263_v19, %v260_v16 }
  0x2e   : > { %v265_v22 = vadd.s32 %v264_v21, %v260_v16  ;;  %v266_v23 = vshll.u32 %v264_v21, 6  ;;  %v267_v24 = vshrl.u32 %v264_v21, 26 }
  0x30   : > { %v268_v26 = vor.u32 %v267_v24, %v266_v23  ;;  %v270_v28 = vadd.s32 %v265_v22, %v912_v4 }
  0x32   : > { %v269_v27 = vxor.u32 %v268_v26, %v265_v22 }
  0x34   : > { %v271_v29 = vadd.s32 %v269_v27, %v917_v25 }
  0x36   : > { %v272_v30 = vadd.s32 1, %v271_v29 }
  0x38   : > { %v273_v31 = vadd.s32 %v272_v30, %v270_v28  ;;  %v274_v32 = vshll.u32 %v272_v30, 17  ;;  %v275_v33 = vshrl.u32 %v272_v30, 15 }
  0x3a   : > { %v276_v34 = vor.u32 %v275_v33, %v274_v32 }
  0x3c   : > { %v277_v35 = vxor.u32 %v276_v34, %v273_v31 }
  0x3e   : > { %v278_v36 = vadd.s32 %v277_v35, %v273_v31  ;;  %v279_v37 = vshll.u32 %v277_v35, 29  ;;  %v280_v38 = vshrl.u32 %v277_v35, 3 }
  0x40   : > { %v281_v39 = vor.u32 %v280_v38, %v279_v37 }
  0x42   : > { %v282_v40 = vxor.u32 %v281_v39, %v278_v36 }
  0x44   : > { %v283_v41 = vadd.s32 %v282_v40, %v278_v36  ;;  %v284_v42 = vshll.u32 %v282_v40, 16  ;;  %v285_v43 = vshrl.u32 %v282_v40, 16 }
  0x46   : > { %v286_v44 = vor.u32 %v285_v43, %v284_v42 }
  0x48   : > { %v287_v45 = vxor.u32 %v286_v44, %v283_v41 }
  0x4a   : > { %v288_v46 = vadd.s32 %v287_v45, %v283_v41  ;;  %v289_v47 = vshll.u32 %v287_v45, 24  ;;  %v290_v48 = vshrl.u32 %v287_v45, 8 }
  0x4c   : > { %v291_v49 = vor.u32 %v290_v48, %v289_v47  ;;  %v293_v51 = vadd.s32 %v288_v46, %v917_v25 }
  0x4e   : > { %v292_v50 = vxor.u32 %v291_v49, %v288_v46 }
  0x50   : > { %v294_v52 = vadd.s32 %v292_v50, %v912_v4 }
  0x52   : > { %v295_v53 = vadd.s32 2, %v294_v52 }
  0x54   : > { %v296_v54 = vadd.s32 %v295_v53, %v293_v51  ;;  %v297_v55 = vshll.u32 %v295_v53, 13  ;;  %v298_v56 = vshrl.u32 %v295_v53, 19 }
  0x56   : > { %v299_v57 = vor.u32 %v298_v56, %v297_v55 }
  0x58   : > { %v300_v58 = vxor.u32 %v299_v57, %v296_v54 }
  0x5a   : > { %v301_v59 = vadd.s32 %v300_v58, %v296_v54  ;;  %v302_v60 = vshll.u32 %v300_v58, 15  ;;  %v303_v61 = vshrl.u32 %v300_v58, 17 }
  0x5c   : > { %v304_v62 = vor.u32 %v303_v61, %v302_v60 }
  0x5e   : > { %v305_v63 = vxor.u32 %v304_v62, %v301_v59 }
  0x60   : > { %v306_v0 = vadd.s32 %v305_v63, %v301_v59  ;;  %v307_v1 = vshll.u32 %v305_v63, 26  ;;  %v308_v2 = vshrl.u32 %v305_v63, 6 }
  0x62   : > { %v309_v3 = vor.u32 %v308_v2, %v307_v1 }
  0x64   : > { %v310_v5 = vxor.u32 %v309_v3, %v306_v0 }
  0x66   : > { %v311_v6 = vadd.s32 %v310_v5, %v306_v0  ;;  %v312_v7 = vshll.u32 %v310_v5, 6  ;;  %v313_v8 = vshrl.u32 %v310_v5, 26 }
  0x68   : > { %v314_v9 = vor.u32 %v313_v8, %v312_v7  ;;  %v316_v11 = vadd.s32 %v311_v6, %v912_v4 }
  0x6a   : > { %v315_v10 = vxor.u32 %v314_v9, %v311_v6 }
  0x6c   : > { %v317_v12 = vadd.s32 %v315_v10, %v912_v4 }
  0x6e   : > { %v318_v13 = vadd.s32 3, %v317_v12 }
  0x70   : > { %v319_v14 = vadd.s32 %v318_v13, %v316_v11  ;;  %v320_v15 = vshll.u32 %v318_v13, 17  ;;  %v321_v16 = vshrl.u32 %v318_v13, 15 }
  0x72   : > { %v322_v17 = vor.u32 %v321_v16, %v320_v15 }
  0x74   : > { %v323_v18 = vxor.u32 %v322_v17, %v319_v14 }
  0x76   : > { %v324_v19 = vadd.s32 %v323_v18, %v319_v14  ;;  %v325_v20 = vshll.u32 %v323_v18, 29  ;;  %v326_v21 = vshrl.u32 %v323_v18, 3 }
  0x78   : > { %v327_v22 = vor.u32 %v326_v21, %v325_v20 }
  0x7a   : > { %v328_v23 = vxor.u32 %v327_v22, %v324_v19 }
  0x7c   : > { %v329_v24 = vadd.s32 %v328_v23, %v324_v19  ;;  %v330_v26 = vshll.u32 %v328_v23, 16  ;;  %v331_v27 = vshrl.u32 %v328_v23, 16 }
  0x7e   : > { %v332_v28 = vor.u32 %v331_v27, %v330_v26 }
  0x80   : > { %v333_v29 = vxor.u32 %v332_v28, %v329_v24 }
  0x82   : > { %v334_v30 = vadd.s32 %v333_v29, %v329_v24  ;;  %v335_v31 = vshll.u32 %v333_v29, 24  ;;  %v336_v32 = vshrl.u32 %v333_v29, 8  ;;  %v808_v29 = vmov -0.00020021426  }
  0x84   : > { %v337_v33 = vor.u32 %v336_v32, %v335_v31  ;;  %v339_v35 = vadd.s32 %v334_v30, %v912_v4  ;;  %v809_v32 = vmov 0.00010095056  }
  0x86   : > { %v338_v34 = vxor.u32 %v337_v33, %v334_v30 }
  0x88   : > { %v340_v36 = vadd.s32 %v338_v34, %v917_v25 }
  0x8a   : > { %v341_v37 = vadd.s32 4, %v340_v36  ;;  %v810_v36 = vmov 0.0013493432  }
  0x8c   : > { %v342_v38 = vadd.s32 %v341_v37, %v339_v35  ;;  %v343_v39 = vshll.u32 %v341_v37, 13  ;;  %v344_v40 = vshrl.u32 %v341_v37, 19 }
  0x8e   : > { %v345_v41 = vor.u32 %v344_v40, %v343_v39  ;;  %v811_v40 = vmov -0.0036734284  }
  0x90   : > { %v346_v42 = vxor.u32 %v345_v41, %v342_v38 }
  0x92   : > { %v347_v43 = vadd.s32 %v346_v42, %v342_v38  ;;  %v348_v44 = vshll.u32 %v346_v42, 15  ;;  %v349_v45 = vshrl.u32 %v346_v42, 17 }
  0x94   : > { %v350_v46 = vor.u32 %v349_v45, %v348_v44  ;;  %v812_v44 = vmov 0.0057395077  }
  0x96   : > { %v351_v47 = vxor.u32 %v350_v46, %v347_v43 }
  0x98   : > { %v352_v48 = vadd.s32 %v351_v47, %v347_v43  ;;  %v353_v49 = vshll.u32 %v351_v47, 26  ;;  %v354_v50 = vshrl.u32 %v351_v47, 6 }
  0x9a   : > { %v355_v51 = vor.u32 %v354_v50, %v353_v49 }
  0x9c   : > { %v356_v52 = vxor.u32 %v355_v51, %v352_v48 }
  0x9e   : > { %v357_v53 = vadd.s32 %v356_v52, %v352_v48  ;;  %v358_v54 = vshll.u32 %v356_v52, 6  ;;  %v359_v55 = vshrl.u32 %v356_v52, 26  ;;  %v813_v48 = vmov -0.0076224613  }
  0x9f   : > { %v814_v52 = vmov 0.0094388705  }
  0xa0   : > { %v360_v56 = vor.u32 %v359_v55, %v358_v54  ;;  %v362_v58 = vadd.s32 %v357_v53, %v917_v25 }
  0xa2   : > { %v361_v57 = vxor.u32 %v360_v56, %v357_v53  ;;  %v438_v56 = vpop.permute.xlu0 %437 }
  0xa4   : > { %v363_v59 = vadd.s32 %v361_v57, %v912_v4  ;;  %v815_v57 = vmov 1.001674  }
  0xa6   : > { %v364_v60 = vadd.s32 5, %v363_v59 }
  0xa8   : > { %v365_v61 = vxor.u32 %v364_v60, %v362_v58 }
  0xaa   : > { %366 = set.rngseed %v365_v61  ;;  %v816_v61 = vmov 2.8329768  }
  0xab   : > { %v367_v62 = vrng }
  0xac   : > { %v368_v63 = vshrl.u32 %v367_v62, 9 }
  0xae   : > { %v369_v0 = vor.u32 1065353216, %v368_v63 }
  0xb0   : > { %v611_v1 = vadd.f32 -1.0, %v369_v0 }
  0xb2   : > { %v372_v2 = vmul.f32 2.0, %v611_v1 }
  0xb4   : > { %v373_v3 = vadd.f32 -0.99999994, %v372_v2 }
  0xb6   : > { %v929_v5 = vmax.f32 %v373_v3, -0.99999994 }
  0xb8   : > { %v375_v6 = vsub.f32 0.0, %v929_v5  ;;  %v428_v63 = vand.u32 2147483647, %v929_v5  ;;  %v430_v1 = vmul.f32 inf, %v929_v5 }
  0xba   : > { %v376_v7 = vmul.f32 %v375_v6, %v929_v5  ;;  %vm429_vm4 = vcmp.eq.f32.partialorder %v428_v63, 1.0  ;;  %v445_v6 = vpop.permute.xlu0 %444 }
  0xbc   : > { %v377_v8 = vadd.f32 1.0, %v376_v7  ;;  %v380_v9 = vmul.f32 -0.5, %v376_v7  ;;  %v383_v4 = vand.u32 2147483647, %v376_v7 }
  0xbe   : > { %691 = vlog2.f32 %v377_v8  ;;  %v381_v25 = vadd.f32 1.0, %v380_v9  ;;  %vm384_vm0 = vcmp.lt.f32.partialorder %v383_v4, 0.0004427343 }
  0xc0   : > { %v382_v12 = vmul.f32 %v381_v25, %v376_v7  ;;  %v441_v7 = vld [vmem:[%s235_s8] sm:$0xff]  ;;  %s715_s8 = scalar_lea.hbm %s1014_s5, 16 }
  0xc1   : > { %v447_v9 = vmul.f32 %v445_v6, %v441_v7  ;;  %p717_p2 = scmp.lt.s32.totalorder %s715_s8, %s711_s28 }
  0xc3   : > { %p718_p3 = por %p717_p2, %p716_p1 }
  0xc4   : > { %v692_v10 = vpop.eup %691 }
  0xc5   : > { %v379_v11 = vmul.f32 0.6931472, %v692_v10  ;;  %p719_p5 = pnand %p718_p3, %p714_p0 }
  0xc7   : > { %v385_v13 = vsel %vm384_vm0, %v382_v12, %v379_v11 }
  0xc8   : > { %v386_v14 = vsub.f32 0.0, %v385_v13 }
  0xca   : > { %693 = vrsqrt.f32 %v386_v14  ;;  %vm396_vm1 = vcmp.eq.f32.partialorder %v386_v14, inf  ;;  %v399_v22 = vand.u32 2147483648, %v386_v14  ;;  %vm398_vm2 = vcmp.eq.f32.partialorder %v386_v14, 0.0 }
  0xcb   : > { %vm387_vm3 = vcmp.lt.f32.partialorder %v386_v14, 5.0  ;;  %v612_v26 = vadd.f32 -2.5, %v386_v14 }
  0xcc   : > { %v403_v30 = vsel %vm387_vm3, 2.8102264e-08, %v808_v29  ;;  %v404_v33 = vsel %vm387_vm3, 3.4327394e-07, %v809_v32  ;;  %v407_v37 = vsel %vm387_vm3, -3.5233877e-06, %v810_v36 }
  0xcd   : > { %v410_v41 = vsel %vm387_vm3, -4.3915065e-06, %v811_v40  ;;  %v413_v45 = vsel %vm387_vm3, 0.00021858087, %v812_v44  ;;  %v416_v49 = vsel %vm387_vm3, -0.001253725, %v813_v48 }
  0xce   : > { %v419_v53 = vsel %vm387_vm3, -0.0041776816, %v814_v52  ;;  %v422_v58 = vsel %vm387_vm3, 0.24664073, %v815_v57  ;;  %v425_v62 = vsel %vm387_vm3, 1.5014094, %v816_v61 }
  0xd0   : > { %v694_v15 = vpop.eup %693 }
  0xd1   : > { %v390_v16 = vmul.f32 %v694_v15, %v386_v14 }
  0xd3   : > { %v391_v17 = vmul.f32 %v694_v15, %v390_v16 }
  0xd5   : > { %v392_v18 = vmul.f32 0.5, %v391_v17 }
  0xd7   : > { %v393_v19 = vsub.f32 1.5, %v392_v18 }
  0xd9   : > { %v394_v20 = vmul.f32 %v694_v15, %v393_v19 }
  0xdb   : > { %v395_v21 = vmul.f32 %v394_v20, %v386_v14 }
  0xdd   : > { %v397_v23 = vsel %vm396_vm1, %v386_v14, %v395_v21 }
  0xde   : > { %v400_v24 = vsel %vm398_vm2, %v399_v22, %v397_v23 }
  0xdf   : > { %v613_v27 = vadd.f32 -3.0, %v400_v24 }
  0xe1   : > { %v402_v28 = vsel %vm387_vm3, %v612_v26, %v613_v27 }
  0xe2   : > { %v405_v31 = vmul.f32 %v403_v30, %v402_v28 }
  0xe4   : > { %v406_v34 = vadd.f32 %v405_v31, %v404_v33 }
  0xe6   : > { %v408_v35 = vmul.f32 %v406_v34, %v402_v28 }
  0xe8   : > { %v409_v38 = vadd.f32 %v408_v35, %v407_v37 }
  0xea   : > { %v411_v39 = vmul.f32 %v409_v38, %v402_v28 }
  0xec   : > { %v412_v42 = vadd.f32 %v411_v39, %v410_v41 }
  0xee   : > { %v414_v43 = vmul.f32 %v412_v42, %v402_v28 }
  0xf0   : > { %v415_v46 = vadd.f32 %v414_v43, %v413_v45 }
  0xf2   : > { %v417_v47 = vmul.f32 %v415_v46, %v402_v28 }
  0xf4   : > { %v418_v50 = vadd.f32 %v417_v47, %v416_v49 }
  0xf6   : > { %v420_v51 = vmul.f32 %v418_v50, %v402_v28 }
  0xf8   : > { %v421_v54 = vadd.f32 %v420_v51, %v419_v53 }
  0xfa   : > { %v423_v55 = vmul.f32 %v421_v54, %v402_v28 }
  0xfc   : > { %v424_v59 = vadd.f32 %v423_v55, %v422_v58 }
  0xfe   : > { %v426_v60 = vmul.f32 %v424_v59, %v402_v28 }
 0x100   : > { %v427_v0 = vadd.f32 %v426_v60, %v425_v62 }
 0x102   : > { %v431_v2 = vmul.f32 %v427_v0, %v929_v5 }
 0x104   : > { %v432_v3 = vsel %vm429_vm4, %v430_v1, %v431_v2 }
 0x105   : > { %v433_v8 = vmul.f32 1.4142135, %v432_v3 }
 0x107   : > { %v440_v5 = vmul.f32 %v438_v56, %v433_v8  ;;  %434 = vst [vmem:[%s227_s23] sm:$0xff] %v433_v8 }
 0x108   : > { %722 = shalt.err (!%p719_p5)
}
 0x109   : > { %621 = dma.vmem_to_hbm [thread:$0]  (%p890_p4), %s487_s9, 128, %s489_s10, %s456_s0   ;;  %v448_v25 = vadd.f32 %v447_v9, %v440_v5 }
 0x10a   : > { %s451_s18 = scalar_lea.sflag [#allocation5], %s945_s15  ;;  %s737_s23 = sshra.s32 %s473_s19, 4  ;;  %s738_s23 = int_to_ptr.hbm [resolvable:$true] %s737_s23 }
 0x10b   : > { %449 = vst [vmem:[%s220_s14] sm:$0xff] %v448_v25  ;;  %s739_s13 = scalar_lea.hbm %s738_s23, 8  ;;  %s743_s16 = scalar_lea.hbm %s1013_s4, 16 }
 0x10c   : > { %p740_p6 = scmp.ne.s32.totalorder %s738_s23, %s739_s13  ;;  %p744_p10 = scmp.lt.s32.totalorder %s738_s23, %s1013_s4 }
 0x10d   : > { %p745_p11 = scmp.lt.s32.totalorder %s743_s16, %s739_s13 }
 0x10e   : > { %p741_p7 = pnand %p740_p6, %p890_p4 }
 0x10f   : > { %p746_p12 = por %p745_p11, %p744_p10 }
 0x110   : > { %p742_p9 = pneg %p741_p7 }
 0x112   : > { %p747_p13 = pnand %p746_p12, %p742_p9 }
 0x114   : > { %750 = shalt.err (!%p747_p13)
}
 0x115   : > { %620 = dma.vmem_to_hbm [thread:$0]  (%p890_p4), %s471_s17, 128, %s473_s19, %s451_s18  }
 0x116 PF: > { %p631_p0 = scmp.ge.s32.totalorder %s805_s25, 2  ;;  %s500_s15 = sand.u32 1, %s785_s20  }
 0x117   : > { %s501_s9 = scalar_lea.sflag [#allocation5], %s500_s15 }
 0x118   : > { %p625_p1 = pnand %p631_p0, %p897_p8 }
 0x11a   : > { %p626_p2 = pneg %p625_p1 }
 0x11c   : > { %776 = dma.done.wait (%p626_p2), %s501_s9, 128  }
 0x11d   : > { %778 = vsyncadd (%p626_p2), %s501_s9, 4294967168  ;;  %s511_s10 = scalar_lea.sflag [#allocation7], %s500_s15 }
 0x11e   : > { %780 = dma.done.wait (%p626_p2), %s511_s10, 128  }
 0x11f   : > { %782 = vsyncadd (%p626_p2), %s511_s10, 4294967168  ;;  %s23_s25 = sadd.s32 1, %s805_s25   ;;  %s1017_s20 = smov %s789_s21 }
 0x120   : > { %p20_p3 = scmp.ge.s32.totalorder %s23_s25, 4   ;;  %s1018_s21 = smov %s793_s22 }
 0x121   : > { %s1019_s22 = smov %s903_s7  ;;  %s1020_s23 = smov %s801_s24 }
 0x122   : > { %s1021_s24 = smov %s1023_s27  ;;  %22 = sbr.rel (!%p20_p3) target bundleno = 8 (0x8), region = 86 }
 0x127   :  { %517 = vsyncpa [#allocation5], 1 }
 0x128   :  { %519 = vsyncpa [#allocation5 + $0x1], 1 }
 0x129   :  { %520 = vsyncpa [#allocation7], 1 }
 0x12a   :  { %522 = vsyncpa [#allocation7 + $0x1], 1 }

// kernel: tpu_custom_call.1
= control target key start
LH: loop header
LB: loop body
LE: loop exit
PB: predicated region body
PF: predicated region fallthrough
CT: control target
= control target key end

     0   :  { %9 = vsyncpa [#allocation3], 0  ;;  %s756_s0 = inlined_call_operand.vmem [shape: f32[8,1], index: 0, kind: input, shape index: {}]   ;;  %s757_s1 = inlined_call_operand.vmem [shape: f32[8,1], index: 1, kind: input, shape index: {}]   ;;  %s758_s2 = inlined_call_operand.vmem [shape: f32[8,256], index: 2, kind: input, shape index: {}]   ;;  %s759_s3 = inlined_call_operand.hbm [shape: f32[8,256], index: 3, kind: input, shape index: {}]   ;;  %s760_s4 = inlined_call_operand.hbm [shape: f32[8,256], index: 4, kind: output, shape index: {}]  }
   0x1   :  { %11 = vsyncpa [#allocation3 + $0x1], 0 }
   0x2   :  { %12 = vsyncpa [#allocation4], 0 }
   0x3   :  { %14 = vsyncpa [#allocation4 + $0x1], 0  ;;  %s625_s15 = smov 0   ;;  %s627_s16 = smov 0  }
   0x4   :  { %s629_s17 = smov 0   ;;  %s631_s18 = smov 0  }
   0x5   :  { %s633_s19 = smov 0   ;;  %s635_s20 = smov 0  }
   0x6 LB: > { %s407_s21 = sadd.s32 4294967295, %s597_s20   ;;  %s408_s22 = sadd.s32 4294967294, %s597_s20   ;;  %s597_s20 = sphi %s635_s20, %s20_s20   ;;  %s593_s19 = sphi %s633_s19, %s769_s19   ;;  %s589_s18 = sphi %s631_s18, %s768_s18   ;;  %s585_s17 = sphi %s629_s17, %s767_s17   ;;  %s581_s16 = sphi %s627_s16, %s766_s16   ;;  %s577_s15 = sphi %s625_s15, %s765_s15  }
   0x7   : > { %s29_s23 = sadd.s32 1, %s593_s19  ;;  %s111_s24 = sadd.s32 1, %s585_s17 }
   0x8   : > { %p30_p0 = scmp.ge.s32.totalorder %s29_s23, 2  ;;  %p118_p1 = scmp.ne.s32.totalorder %s585_s17, %s581_s16 }
   0x9   : > { %p119_p2 = scmp.eq.s32.totalorder %s597_s20, 0  ;;  %p124_p3 = scmp.ne.s32.totalorder %s581_s16, %s577_s15 }
   0xa   : > { %s771_s23 = smov (%p30_p0, %s29_s23), 0  ;;  %p125_p5 = scmp.eq.s32.totalorder %s407_s21, 0 }
   0xb   : > { %p666_p4 = por %p119_p2, %p118_p1  ;;  %s107_s26 = ssub.s32 %s593_s19, %s771_s23 }
   0xc   : > { %p150_p6 = scmp.eq.s32.totalorder %s407_s21, 1  ;;  %p109_p7 = scmp.eq.s32.totalorder %s107_s26, 0 }
   0xd   : > { %p672_p8 = por %p125_p5, %p124_p3  ;;  %p156_p10 = scmp.eq.s32.totalorder %s408_s22, 1 }
   0xe   : > { %p676_p9 = por %p150_p6, %p118_p1  ;;  %p410_p12 = scmp.ge.s32.totalorder %s597_s20, 2 }
   0xf   : > { %s681_s29 = scalar_select %p109_p7, %s585_s17, %s111_s24  }
  0x10   : > { %p683_p11 = por %p156_p10, %p124_p3  ;;  %p433_p13 = scmp.lt.s32.totalorder %s597_s20, 2 }
  0x11   : > { %s193_s5 = sand.u32 1, %s585_s17   ;;  %s412_s7 = sshll.u32 %s593_s19, 3 }
  0x12   : > { %s411_s6 = sshll.u32 %s193_s5, 3  ;;  %s203_s10 = scalar_lea.hbm %s759_s3, %s412_s7 }
  0x13   : > { %s197_s11 = scalar_lea.vmem [#allocation2], %s411_s6  ;;  %s205_s13 = sshll.u32 %s203_s10, 4  ;;  %s206_s13 = int_to_ptr.hbm [resolvable:$true] %s205_s13 }
  0x14   : > { %s207_s12 = sshll.u32 %s197_s11, 4  ;;  %p426_p0 = pnand %p433_p13, %p666_p4  ;;  %s208_s12 = int_to_ptr.vmem [resolvable:$true] %s207_s12 }
  0x15   : > { %p413_p1 = scmp.ge.s32.totalorder %s597_s20, 1  ;;  %p212_p2 = scmp.lt.s32.totalorder %s597_s20, 3 }
  0x16   : > { %s194_s14 = scalar_lea.sflag [#allocation3], %s193_s5 }
  0x17   : > { %428 = dma.hbm_to_vmem [thread:$0]  (!%p426_p0), %s206_s13, 128, %s208_s12, %s194_s14  }
  0x18   : > { %p213_p3 = pnand %p413_p1, %p212_p2 }
  0x19   : > { %s699_s21 = sand.u32 (!%p213_p3), 1, %s581_s16  }
  0x1a   : > { %216 = sbr.rel (%p213_p3) target bundleno = 164 (0xa4), region = 36  ;;  %s414_s22 = sshll.u32 (!%p213_p3), %s699_s21, 3 }
  0x1b   : > { %s219_s24 = scalar_lea.sflag (!%p213_p3), [#allocation3], %s699_s21  ;;  %s222_s26 = scalar_lea.vmem (!%p213_p3), [#allocation2], %s414_s22 }
  0x1f   : > { %568 = dma.done.wait (%p672_p8), %s219_s24, 128  }
  0x20   : > { %570 = vsyncadd (%p672_p8), %s219_s24, 4294967168  ;;  %v599_v0 = vmov 0   ;;  %v268_v1 = vld [vmem:[%s757_s1] sm:$0xff]  ;;  %p258_p4 = scmp.lt.s32.totalorder %s589_s18, 1  ;;  %s418_s9 = sshll.u32 %s589_s18, 3 }
  0x21   : > { %484 = vset.pattern.permute.xlu0 %v599_v0  ;;  %v266_v2 = vld [vmem:[%s756_s0] sm:$0xff]  ;;  %s298_s24 = scalar_lea.hbm %s760_s4, %s418_s9  ;;  %s255_s25 = scalar_lea.vmem [#allocation5], %s414_s22 }
  0x22   : > { %272 = vperm.xlu0 %484, %v268_v1   ;;  %s259_s8 = scalar_select %p258_p4, %s589_s18, 1  ;;  %v269_v4 = vld [vmem:[%s222_s26] sm:$0xff] }
  0x23   : > { %s300_s5 = sshll.u32 %s255_s25, 4  ;;  %s302_s6 = sshll.u32 %s298_s24, 4  ;;  %s301_s5 = int_to_ptr.vmem [resolvable:$true] %s300_s5  ;;  %s303_s6 = int_to_ptr.hbm [resolvable:$true] %s302_s6 }
  0x24   : > { %s416_s27 = sshll.u32 %s259_s8, 3  ;;  %s286_s18 = scalar_lea.sflag [#allocation4], %s699_s21 }
  0x25   : > { %s263_s12 = scalar_lea.vmem %s758_s2, %s416_s27  ;;  %s529_s7 = sshra.s32 %s303_s6, 4  ;;  %s530_s7 = int_to_ptr.hbm [resolvable:$true] %s529_s7 }
  0x26   : > { %v276_v5 = vld [vmem:[%s263_s12] sm:$0xff]  ;;  %s531_s8 = scalar_lea.hbm %s530_s7, 8  ;;  %s535_s22 = scalar_lea.hbm %s760_s4, 16 }
  0x27   : > { %p532_p5 = scmp.ne.s32.totalorder %s530_s7, %s531_s8  ;;  %p536_p8 = scmp.lt.s32.totalorder %s530_s7, %s760_s4 }
  0x28   : > { %p537_p10 = scmp.lt.s32.totalorder %s535_s22, %s531_s8 }
  0x29   : > { %p533_p6 = pnand %p532_p5, %p676_p9 }
  0x2a   : > { %279 = vperm.xlu0 %484, %v266_v2   ;;  %p538_p13 = por %p537_p10, %p536_p8 }
  0x2b   : > { %p534_p7 = pneg %p533_p6 }
  0x2d   : > { %p539_p0 = pnand %p538_p13, %p534_p7 }
  0x94   : > { %v273_v3 = vpop.permute.xlu0 %272 }
  0x95   : > { %v275_v7 = vmul.f32 %v273_v3, %v269_v4 }
  0x9c   : > { %v280_v6 = vpop.permute.xlu0 %279 }
  0x9d   : > { %v282_v8 = vmul.f32 %v280_v6, %v276_v5 }
  0x9f   : > { %v283_v9 = vadd.f32 %v282_v8, %v275_v7 }
  0xa1   : > { %284 = vst [vmem:[%s255_s25] sm:$0xff] %v283_v9 }
  0xa2   : > { %542 = shalt.err (!%p539_p0)
}
  0xa3   : > { %423 = dma.vmem_to_hbm [thread:$0]  (%p676_p9), %s301_s5, 128, %s303_s6, %s286_s18  }
  0xa4 PF: > { %s314_s21 = sand.u32 1, %s577_s15   ;;  %p430_p1 = pnand %p410_p12, %p683_p11 }
  0xa5   : > { %s315_s11 = scalar_lea.sflag [#allocation4], %s314_s21 }
  0xa6   : > { %p431_p2 = pneg %p430_p1 }
  0xa8   : > { %572 = dma.done.wait (%p431_p2), %s315_s11, 128  }
  0xa9   : > { %574 = vsyncadd (%p431_p2), %s315_s11, 4294967168  ;;  %s20_s20 = sadd.s32 1, %s597_s20   ;;  %s765_s15 = smov %s581_s16 }
  0xaa   : > { %p17_p3 = scmp.ge.s32.totalorder %s20_s20, 4   ;;  %s766_s16 = smov %s585_s17 }
  0xab   : > { %s767_s17 = smov %s681_s29  ;;  %s768_s18 = smov %s593_s19 }
  0xac   : > { %s769_s19 = smov %s771_s23  ;;  %19 = sbr.rel (!%p17_p3) target bundleno = 6 (0x6), region = 86 }
  0xb1   :  { %321 = vsyncpa [#allocation3], 1 }
  0xb2   :  { %323 = vsyncpa [#allocation3 + $0x1], 1 }
  0xb3   :  { %324 = vsyncpa [#allocation4], 1 }
  0xb4   :  { %326 = vsyncpa [#allocation4 + $0x1], 1 }

</bundles_post_ra>
